<compile_context>
chip_gen: v7x
topology: tpu7x:2x2x1
jax: 0.10.0
libtpu: 0.0.40
codegen_flags: <defaults>
</compile_context>

<pallas_src>
import numpy as np
import jax
import jax.numpy as jnp
from jax.experimental import pallas as pl
from jax.experimental.pallas import tpu as pltpu


# ----------------------------- div-tree construction (pure numpy glue) -----------------------------
def _2div(arr):
    arr_res = arr.copy()
    arr_pieces = []
    pa = 0
    st = 0
    needdivcnt = 0
    for i, a in enumerate(arr):
        if a != pa:
            arr_pieces.append([st, i])
            if i - st != 1:
                needdivcnt += 1
            pa = a
            st = i
    arr_pieces.append([st, len(arr)])
    if len(arr) - st != 1:
        needdivcnt += 1
    offset = range(len(arr_pieces), len(arr_pieces) + needdivcnt)
    p = 0
    for arr_p in arr_pieces:
        length = arr_p[1] - arr_p[0]
        if length == 1:
            continue
        half_len = int(np.ceil(length / 2))
        for j in range(arr_p[0] + half_len, arr_p[1]):
            arr_res[j] = offset[p]
        p += 1
    return arr_res


def get_division_tree(n_agents):
    agent2divitreeindex = np.arange(n_agents)
    np.random.shuffle(agent2divitreeindex)
    max_div = np.ceil(np.log2(n_agents)).astype(int)
    levels = np.zeros(shape=(max_div + 1, n_agents), dtype=int)
    for ith, _ in enumerate(levels):
        if ith == 0:
            continue
        res = _2div(levels[ith - 1, :])
        levels[ith, :] = res
    res_levels = levels.copy()
    for i, div_tree_index in enumerate(agent2divitreeindex):
        res_levels[:, i] = levels[:, div_tree_index]
    return res_levels


# ----------------------------- Pallas kernel -----------------------------
def _divtree_kernel(x_ref, w1_ref, b1_ref, w2_ref, b2_ref, o_ref):
    # x_ref:  (Bt, n_agent*h_dim)       lane-dense activation slab (one-hot folded into b1)
    # w1_ref: (n_agent*h_dim, n_agent*H) block-diagonal first-layer weights (resident)
    # b1_ref: (1, n_agent*H)             per-agent effective bias, f32
    # w2_ref: (n_agent*H, n_agent*A)     block-diagonal final-layer weights (resident)
    # b2_ref: (1, n_agent*A)             per-agent final bias, f32
    # o_ref:  (Bt, n_agent*A)            lane-stacked output slab (single wide store)
    h = jnp.dot(x_ref[...], w1_ref[...], preferred_element_type=jnp.float32)   # MXU, f32 acc
    h = jnp.maximum(h + b1_ref[...], 0.0)                                      # f32 bias + ReLU
    y = jnp.dot(h.astype(w2_ref.dtype), w2_ref[...],
                preferred_element_type=jnp.float32)                            # MXU, f32 acc
    o_ref[...] = (y + b2_ref[...]).astype(o_ref.dtype)


def divtree_forward(x_in, params, div_tree, current_level, *,
                    compute_dtype=jnp.float32, batch_tile=512):
    """x_in: (B, n_agent, h_dim) float32. Returns (x2, None) with x2: (B, n_agent, n_action)."""
    B, n_agent, h_dim = x_in.shape
    W1_all, b1_all, W2_all, b2_all = params          # W1_all: (n_nets, h_dim + n_agent, H)
    H = W1_all.shape[-1]
    A = W2_all.shape[-1]
    K1, K2, K3 = n_agent * h_dim, n_agent * H, n_agent * A

    # --- per-agent net selection (on device; current_level may be traced) ---
    net_idx = jnp.asarray(np.asarray(div_tree), jnp.int32)[current_level]       # (n_agent,)

    # --- fold the one-hot agent id into an effective first-layer bias ---
    # concat(x, onehot_i) @ W1[k]  ==  x @ W1[k, :h_dim, :] + W1[k, h_dim + i, :]
    agent_ids = jnp.arange(n_agent)
    b1_eff = (b1_all[net_idx] + W1_all[net_idx, h_dim + agent_ids, :])           # (n_agent, H)
    b2_eff = b2_all[net_idx]                                                     # (n_agent, A)
    b1_flat = b1_eff.reshape(1, K2).astype(jnp.float32)                          # (1, n_agent*H)
    b2_flat = b2_eff.reshape(1, K3).astype(jnp.float32)                          # (1, n_agent*A)

    # --- gather per-agent weights and build block-diagonal operands (wrapper-side, tiny) ---
    W1g = W1_all[net_idx, :h_dim, :].astype(compute_dtype)                       # (n_agent, h_dim, H)
    W2g = W2_all[net_idx].astype(compute_dtype)                                  # (n_agent, H, A)
    eye = jnp.eye(n_agent, dtype=compute_dtype)
    W1bd = jnp.einsum('ab,adh->adbh', eye, W1g).reshape(K1, K2)                  # block-diag
    W2bd = jnp.einsum('ab,ahc->ahbc', eye, W2g).reshape(K2, K3)                  # block-diag

    # --- lane-dense activation slab (contiguous reshape, no transpose) ---
    x_c = x_in.astype(compute_dtype).reshape(B, K1)

    # --- batch tiling: row-align 8 (f32) / 16 (bf16), >= 2 grid steps when possible (v7x 2 TCs) ---
    align = 16 if jnp.dtype(compute_dtype) == jnp.dtype(jnp.bfloat16) else 8
    B_round = -(-B // align) * align
    Bt = max(align, (int(batch_tile) // align) * align)
    Bt = min(Bt, B_round)
    if B_round >= 2 * align and Bt > B_round // 2:
        Bt = max(align, ((B_round // 2) // align) * align)
    Bp = -(-B // Bt) * Bt
    if Bp != B:
        x_c = jnp.pad(x_c, ((0, Bp - B), (0, 0)))

    # --- VMEM budget (inputs/outputs are double-buffered by BlockSpec pipelining by default) ---
    def _nbytes(shape, dt):
        return int(np.prod(shape)) * jnp.dtype(dt).itemsize

    est = (2 * _nbytes((Bt, K1), compute_dtype)          # x tile (double-buffered)
           + 2 * _nbytes((K1, K2), compute_dtype)        # W1bd
           + 2 * _nbytes((1, K2), jnp.float32)           # b1
           + 2 * _nbytes((K2, K3), compute_dtype)        # W2bd
           + 2 * _nbytes((1, K3), jnp.float32)           # b2
           + 2 * _nbytes((Bt, K3), jnp.float32))         # out tile (double-buffered)
    vmem_limit = int(min(64 * 2 ** 20, max(16 * 2 ** 20, 4 * est)))   # 64 MiB cap is v7x-safe

    out = pl.pallas_call(
        _divtree_kernel,
        out_shape=jax.ShapeDtypeStruct((Bp, K3), jnp.float32),
        grid_spec=pltpu.PrefetchScalarGridSpec(
            num_scalar_prefetch=0,
            grid=(Bp // Bt,),
            in_specs=[
                pl.BlockSpec((Bt, K1), lambda b: (b, 0)),
                pl.BlockSpec((K1, K2), lambda b: (0, 0)),   # resident (constant index_map)
                pl.BlockSpec((1, K2), lambda b: (0, 0)),    # resident
                pl.BlockSpec((K2, K3), lambda b: (0, 0)),   # resident
                pl.BlockSpec((1, K3), lambda b: (0, 0)),    # resident
            ],
            out_specs=pl.BlockSpec((Bt, K3), lambda b: (b, 0)),
        ),
        compiler_params=pltpu.CompilerParams(
            dimension_semantics=("parallel",),              # batch-tile axis splits across TCs
            vmem_limit_bytes=vmem_limit),
    )(x_c, W1bd, b1_flat, W2bd, b2_flat)

    x2 = out[:B].reshape(B, n_agent, A)                     # cheap reshape, no transpose
    return x2, None


# ----------------------------- deterministic parameter init -----------------------------
def init_params(key, n_agent, h_dim, n_action):
    D = h_dim + n_agent
    k1, k2, k3 = jax.random.split(key, 3)
    # nn.Linear(h_dim + n_agent, h_dim)
    W1 = jax.random.normal(k1, (n_agent, D, h_dim), jnp.float32) * (1.0 / np.sqrt(D))
    b1 = jax.random.normal(k2, (n_agent, h_dim), jnp.float32) * 0.01
    # LinearFinal(h_dim, n_action): small-scale final layer init
    W2 = jax.random.normal(k3, (n_agent, h_dim, n_action), jnp.float32) * 0.01
    b2 = jnp.zeros((n_agent, n_action), jnp.float32)
    return W1, b1, W2, b2


def _reference_forward(x_in, params, div_tree, current_level):
    """Pure-JAX reference mirroring the PyTorch loop (for correctness check only)."""
    B, n_agent, h_dim = x_in.shape
    W1_all, b1_all, W2_all, b2_all = params
    onehot = jnp.eye(n_agent, dtype=x_in.dtype)
    x0 = jnp.concatenate([x_in, jnp.broadcast_to(onehot[None], (B, n_agent, n_agent))], axis=-1)
    outs = []
    idx_row = np.asarray(div_tree)[current_level]
    for i in range(n_agent):
        k = int(idx_row[i])
        h = jnp.maximum(x0[:, i, :] @ W1_all[k] + b1_all[k], 0.0)
        outs.append(h @ W2_all[k] + b2_all[k])
    return jnp.stack(outs, axis=-2)


if __name__ == "__main__":
    # small, module-consistent shapes
    n_agent = 4
    h_dim = 32
    n_action = 8
    batch = 8

    np.random.seed(0)                      # deterministic division tree (uses np.random.shuffle)
    div_tree = get_division_tree(n_agent)  # shape (max_level+1, n_agent)
    current_level = div_tree.shape[0] - 1  # exercise the per-agent branching path

    key = jax.random.PRNGKey(0)
    k_params, k_x = jax.random.split(key)
    params = init_params(k_params, n_agent, h_dim, n_action)
    x_in = jax.random.normal(k_x, (batch, n_agent, h_dim), jnp.float32)

    ref = _reference_forward(x_in, params, div_tree, current_level)

    # f32 compute path (exact-ish vs reference)
    x2, aux = divtree_forward(x_in, params, div_tree, current_level)
    x2 = jax.block_until_ready(x2)
    assert x2.shape == (batch, n_agent, n_action)
    assert aux is None
    np.testing.assert_allclose(np.asarray(x2), np.asarray(ref), rtol=1e-5, atol=1e-5)

    # bf16 MXU-operand path (f32 accumulation + f32 bias/ReLU)
    x2_bf16, _ = divtree_forward(x_in, params, div_tree, current_level,
                                 compute_dtype=jnp.bfloat16)
    x2_bf16 = jax.block_until_ready(x2_bf16)
    np.testing.assert_allclose(np.asarray(x2_bf16), np.asarray(ref), rtol=5e-2, atol=5e-2)

    # shared-net level 0 (PyTorch's `current_level == 0` branch)
    x2_l0, _ = divtree_forward(x_in, params, div_tree, 0)
    x2_l0 = jax.block_until_ready(x2_l0)
    ref_l0 = _reference_forward(x_in, params, div_tree, 0)
    np.testing.assert_allclose(np.asarray(x2_l0), np.asarray(ref_l0), rtol=1e-5, atol=1e-5)

    # larger, non-tile-aligned batch: exercises padding + a multi-step "parallel" grid
    big_batch = 300
    x_big = jax.random.normal(jax.random.PRNGKey(1), (big_batch, n_agent, h_dim), jnp.float32)
    ref_big = _reference_forward(x_big, params, div_tree, current_level)
    x2_big, _ = divtree_forward(x_big, params, div_tree, current_level)
    x2_big = jax.block_until_ready(x2_big)
    assert x2_big.shape == (big_batch, n_agent, n_action)
    np.testing.assert_allclose(np.asarray(x2_big), np.asarray(ref_big), rtol=1e-5, atol=1e-5)

    print("KERNEL_OK")
</pallas_src>

<mosaic_0001>
module attributes {stable_mosaic.version = 11 : i64} {
  func.func @_divtree_kernel(%arg0: i32, %arg1: memref<8x128xf32, #tpu.memory_space<vmem>>, %arg2: memref<128x128xf32, #tpu.memory_space<vmem>>, %arg3: memref<1x128xf32, #tpu.memory_space<vmem>>, %arg4: memref<128x32xf32, #tpu.memory_space<vmem>>, %arg5: memref<1x32xf32, #tpu.memory_space<vmem>>, %arg6: memref<8x32xf32, #tpu.memory_space<vmem>>) attributes {dimension_semantics = [#tpu.dimension_semantics<parallel>], iteration_bounds = array<i64: 1>, scalar_prefetch = 0 : i64, scratch_operands = 0 : i64, tpu.core_type = #tpu.core_type<tc>, window_params = [{transform_indices = @transform_0, window_bounds = array<i64: 8, 128>}, {pipeline_mode = #tpu.pipeline_mode<synchronous>, transform_indices = @transform_1, window_bounds = array<i64: 128, 128>}, {pipeline_mode = #tpu.pipeline_mode<synchronous>, transform_indices = @transform_2, window_bounds = array<i64: 1, 128>}, {pipeline_mode = #tpu.pipeline_mode<synchronous>, transform_indices = @transform_3, window_bounds = array<i64: 128, 32>}, {pipeline_mode = #tpu.pipeline_mode<synchronous>, transform_indices = @transform_4, window_bounds = array<i64: 1, 32>}, {transform_indices = @transform_5, window_bounds = array<i64: 8, 32>}]} {
    %c0 = arith.constant 0 : index
    %c0_0 = arith.constant 0 : index
    %0 = vector.load %arg1[%c0, %c0_0] : memref<8x128xf32, #tpu.memory_space<vmem>>, vector<8x128xf32>
    %c0_1 = arith.constant 0 : index
    %c0_2 = arith.constant 0 : index
    %1 = vector.load %arg2[%c0_1, %c0_2] : memref<128x128xf32, #tpu.memory_space<vmem>>, vector<128x128xf32>
    %cst = arith.constant dense<0.000000e+00> : vector<8x128xf32>
    %2 = tpu.matmul %0, %1, %cst {dimension_numbers = #tpu.dot_dimension_numbers<[1], [0], [0], [1], [0, 0, 1, 1], [], []>} : vector<8x128xf32>, vector<128x128xf32>, vector<8x128xf32> -> vector<8x128xf32>
    %c0_3 = arith.constant 0 : index
    %c0_4 = arith.constant 0 : index
    %3 = vector.load %arg3[%c0_3, %c0_4] : memref<1x128xf32, #tpu.memory_space<vmem>>, vector<1x128xf32>
    %4 = vector.broadcast %3 : vector<1x128xf32> to vector<8x128xf32>
    %5 = arith.addf %2, %4 : vector<8x128xf32>
    %cst_5 = arith.constant 0.000000e+00 : f32
    %6 = vector.broadcast %cst_5 : f32 to vector<8x128xf32>
    %7 = arith.maximumf %5, %6 : vector<8x128xf32>
    %c0_6 = arith.constant 0 : index
    %c0_7 = arith.constant 0 : index
    %8 = vector.load %arg4[%c0_6, %c0_7] : memref<128x32xf32, #tpu.memory_space<vmem>>, vector<128x32xf32>
    %cst_8 = arith.constant dense<0.000000e+00> : vector<8x32xf32>
    %9 = tpu.matmul %7, %8, %cst_8 {dimension_numbers = #tpu.dot_dimension_numbers<[1], [0], [0], [1], [0, 0, 1, 1], [], []>} : vector<8x128xf32>, vector<128x32xf32>, vector<8x32xf32> -> vector<8x32xf32>
    %c0_9 = arith.constant 0 : index
    %c0_10 = arith.constant 0 : index
    %10 = vector.load %arg5[%c0_9, %c0_10] : memref<1x32xf32, #tpu.memory_space<vmem>>, vector<1x32xf32>
    %11 = vector.broadcast %10 : vector<1x32xf32> to vector<8x32xf32>
    %12 = arith.addf %9, %11 : vector<8x32xf32>
    %c0_11 = arith.constant 0 : index
    %c0_12 = arith.constant 0 : index
    %13 = vector.load %arg6[%c0_11, %c0_12] : memref<8x32xf32, #tpu.memory_space<vmem>>, vector<8x32xf32>
    tpu.vector_store %arg6[%c0_11, %c0_12], %12 {strides = array<i32>} : memref<8x32xf32, #tpu.memory_space<vmem>>, vector<8x32xf32>,
    return
  }
  func.func @transform_0(%arg0: i32) -> (i32, i32) {
    %c0_i32 = arith.constant 0 : i32
    %c0_i32_0 = arith.constant 0 : i32
    return %arg0, %c0_i32 : i32, i32
  }
  func.func @transform_1(%arg0: i32) -> (i32, i32) {
    %c0_i32 = arith.constant 0 : i32
    %c0_i32_0 = arith.constant 0 : i32
    %c0_i32_1 = arith.constant 0 : i32
    return %c0_i32, %c0_i32_0 : i32, i32
  }
  func.func @transform_2(%arg0: i32) -> (i32, i32) {
    %c0_i32 = arith.constant 0 : i32
    %c0_i32_0 = arith.constant 0 : i32
    %c0_i32_1 = arith.constant 0 : i32
    return %c0_i32, %c0_i32_0 : i32, i32
  }
  func.func @transform_3(%arg0: i32) -> (i32, i32) {
    %c0_i32 = arith.constant 0 : i32
    %c0_i32_0 = arith.constant 0 : i32
    %c0_i32_1 = arith.constant 0 : i32
    return %c0_i32, %c0_i32_0 : i32, i32
  }
  func.func @transform_4(%arg0: i32) -> (i32, i32) {
    %c0_i32 = arith.constant 0 : i32
    %c0_i32_0 = arith.constant 0 : i32
    %c0_i32_1 = arith.constant 0 : i32
    return %c0_i32, %c0_i32_0 : i32, i32
  }
  func.func @transform_5(%arg0: i32) -> (i32, i32) {
    %c0_i32 = arith.constant 0 : i32
    %c0_i32_0 = arith.constant 0 : i32
    return %arg0, %c0_i32 : i32, i32
  }
}

</mosaic_0001>

<bundles_post_ra>
// kernel: tpu_custom_call.1
= control target key start
LH: loop header
LB: loop body
LE: loop exit
PB: predicated region body
PF: predicated region fallthrough
CT: control target
= control target key end

     0   :  { %v407_v3 = vmov 0.0|0.0   ;;  %vm408_vm0 = vmmov 0   ;;  %v409_v6 = vmov 0.0   ;;  %s574_s0 = inlined_call_operand.vmem [shape: f32[8,128], index: 0, kind: input, shape index: {}]   ;;  %s575_s1 = inlined_call_operand.vmem [shape: f32[128,128], index: 1, kind: input, shape index: {}]   ;;  %s576_s2 = inlined_call_operand.vmem [shape: f32[1,128], index: 2, kind: input, shape index: {}]   ;;  %s577_s3 = inlined_call_operand.vmem [shape: f32[128,32], index: 3, kind: input, shape index: {}]   ;;  %s578_s4 = inlined_call_operand.vmem [shape: f32[1,32], index: 4, kind: input, shape index: {}]   ;;  %s579_s5 = inlined_call_operand.hbm [shape: f32[8,32], index: 5, kind: output, shape index: {}]  }
   0x1   :  { %v22_v0 = vld [vmem:[%s575_s1] sm:$0xff]  ;;  %v23_v1 = vld [vmem:[%s575_s1 + $0x8] sm:$0xff]  ;;  %v24_v2 = vld [vmem:[%s575_s1 + $0x10] sm:$0xff]  ;;  %331 = vmatprep.subr.bf16.mxu0 %v407_v3  ;;  %293 = vmatprep.mubr.msk.f32.mxu0 %vm408_vm0, %v409_v6 }
   0x2   :  { %v332_v4 = vpack.c.bf16 %v23_v1, %v22_v0  ;;  %v25_v5 = vld [vmem:[%s575_s1 + $0x18] sm:$0xff]  ;;  %355 = vmatprep.subr.bf16.mxu1 %v407_v3  ;;  %328 = vmatprep.mubr.msk.f32.mxu1 %vm408_vm0, %v409_v6  ;;  %v26_v8 = vld [vmem:[%s575_s1 + $0x20] sm:$0xff]  ;;  %v27_v9 = vld [vmem:[%s575_s1 + $0x28] sm:$0xff] }
   0x3   :  { %v335_v7 = vpack.c.bf16 %v25_v5, %v24_v2  ;;  %v116_v10 = vld [vmem:[%s577_s3] sm:$0xff]  ;;  %v117_v11 = vld [vmem:[%s577_s3 + $0x8] sm:$0xff]  ;;  %v118_v12 = vld [vmem:[%s577_s3 + $0x10] sm:$0xff]  ;;  %v338_v14 = vpack.c.bf16 %v27_v9, %v26_v8 }
   0x4   :  { %333 = vmatpush3.bf16.msra.mxu0 %v332_v4  ;;  %v119_v13 = vld [vmem:[%s577_s3 + $0x18] sm:$0xff]  ;;  %v356_v15 = vpack.c.bf16 %v117_v11, %v116_v10  ;;  %v28_v16 = vld [vmem:[%s575_s1 + $0x30] sm:$0xff]  ;;  %v120_v19 = vld [vmem:[%s577_s3 + $0x20] sm:$0xff] }
   0x5   :  { %334 = vmatprep.subr.bf16.mxu0 %v407_v3  ;;  %v29_v17 = vld [vmem:[%s575_s1 + $0x38] sm:$0xff]  ;;  %v359_v18 = vpack.c.bf16 %v119_v13, %v118_v12  ;;  %v121_v20 = vld [vmem:[%s577_s3 + $0x28] sm:$0xff] }
   0x6   :  { %357 = vmatpush3.bf16.msra.mxu1 %v356_v15 }
   0x7   :  { %358 = vmatprep.subr.bf16.mxu1 %v407_v3 }
   0x8   :  { %336 = vmatpush3.bf16.msra.mxu0 %v335_v7 }
   0x9   :  { %337 = vmatprep.subr.bf16.mxu0 %v407_v3 }
   0xa   :  { %10 = vsyncpa [#allocation3], 0  ;;  %v341_v21 = vpack.c.bf16 %v29_v17, %v28_v16  ;;  %v30_v22 = vld [vmem:[%s575_s1 + $0x40] sm:$0xff]  ;;  %v31_v23 = vld [vmem:[%s575_s1 + $0x48] sm:$0xff]  ;;  %360 = vmatpush3.bf16.msra.mxu1 %v359_v18  ;;  %v362_v24 = vpack.c.bf16 %v121_v20, %v120_v19  ;;  %s410_s11 = smov [#allocation2]   ;;  %vm209_vm1 = vcmask 261120  }
   0xb   :  { %361 = vmatprep.subr.bf16.mxu1 %v407_v3  ;;  %v122_v25 = vld [vmem:[%s577_s3 + $0x30] sm:$0xff]  ;;  %v123_v26 = vld [vmem:[%s577_s3 + $0x38] sm:$0xff]  ;;  %v344_v27 = vpack.c.bf16 %v31_v23, %v30_v22  ;;  %v124_v31 = vld [vmem:[%s577_s3 + $0x40] sm:$0xff]  ;;  %s217_s12 = sshll.u32 %s410_s11, 4  ;;  %s218_s12 = int_to_ptr.vmem [resolvable:$true] %s217_s12 }
   0xc   :  { %339 = vmatpush3.bf16.msra.mxu0 %v338_v14  ;;  %v32_v28 = vld [vmem:[%s575_s1 + $0x50] sm:$0xff]  ;;  %v33_v29 = vld [vmem:[%s575_s1 + $0x58] sm:$0xff]  ;;  %v365_v30 = vpack.c.bf16 %v123_v26, %v122_v25  ;;  %v125_v32 = vld [vmem:[%s577_s3 + $0x48] sm:$0xff]  ;;  %p388_p1 = scmp.lt.s32.totalorder %s218_s12, %s218_s12 }
   0xd   :  { %340 = vmatprep.subr.bf16.mxu0 %v407_v3  ;;  %v347_v33 = vpack.c.bf16 %v33_v29, %v32_v28  ;;  %v34_v34 = vld [vmem:[%s575_s1 + $0x60] sm:$0xff]  ;;  %v35_v35 = vld [vmem:[%s575_s1 + $0x68] sm:$0xff]  ;;  %v368_v36 = vpack.c.bf16 %v125_v32, %v124_v31  ;;  %v126_v37 = vld [vmem:[%s577_s3 + $0x50] sm:$0xff] }
   0xe   :  { %363 = vmatpush3.bf16.msra.mxu1 %v362_v24  ;;  %v127_v38 = vld [vmem:[%s577_s3 + $0x58] sm:$0xff]  ;;  %v350_v39 = vpack.c.bf16 %v35_v35, %v34_v34  ;;  %v36_v40 = vld [vmem:[%s575_s1 + $0x70] sm:$0xff]  ;;  %v128_v43 = vld [vmem:[%s577_s3 + $0x60] sm:$0xff] }
   0xf   :  { %364 = vmatprep.subr.bf16.mxu1 %v407_v3  ;;  %v37_v41 = vld [vmem:[%s575_s1 + $0x78] sm:$0xff]  ;;  %v371_v42 = vpack.c.bf16 %v127_v38, %v126_v37  ;;  %v129_v44 = vld [vmem:[%s577_s3 + $0x68] sm:$0xff]  ;;  %v21_v47 = vld [vmem:[%s574_s0] sm:$0xff] }
  0x10   :  { %342 = vmatpush3.bf16.msra.mxu0 %v341_v21  ;;  %v353_v45 = vpack.c.bf16 %v37_v41, %v36_v40  ;;  %v374_v46 = vpack.c.bf16 %v129_v44, %v128_v43  ;;  %v130_v48 = vld [vmem:[%s577_s3 + $0x70] sm:$0xff]  ;;  %v131_v49 = vld [vmem:[%s577_s3 + $0x78] sm:$0xff]  ;;  %v225_v51 = vld [vmem:[%s576_s2] ss:$0 sm:$0xff]  ;;  %s383_s3 = scalar_lea.vmem %s218_s12, 128 }
  0x11   :  { %343 = vmatprep.subr.bf16.mxu0 %v407_v3  ;;  %v377_v50 = vpack.c.bf16 %v131_v49, %v130_v48  ;;  %v226_v56 = vld [vmem:[%s578_s4] ss:$0 sm:$0xff]  ;;  %p384_p0 = scmp.ne.s32.totalorder %s218_s12, %s383_s3  ;;  %p389_p2 = scmp.lt.s32.totalorder %s383_s3, %s383_s3 }
  0x12   :  { %366 = vmatpush3.bf16.msra.mxu1 %v365_v30 }
  0x13   :  { %367 = vmatprep.subr.bf16.mxu1 %v407_v3  ;;  %p390_p3 = por %p389_p2, %p388_p1 }
  0x14   :  { %345 = vmatpush3.bf16.msra.mxu0 %v344_v27 }
  0x15   :  { %346 = vmatprep.subr.bf16.mxu0 %v407_v3  ;;  %p391_p4 = pnand %p390_p3, %p384_p0 }
  0x16   :  { %369 = vmatpush3.bf16.msra.mxu1 %v368_v36 }
  0x17   :  { %370 = vmatprep.subr.bf16.mxu1 %v407_v3 }
  0x18   :  { %348 = vmatpush3.bf16.msra.mxu0 %v347_v33 }
  0x19   :  { %349 = vmatprep.subr.bf16.mxu0 %v407_v3 }
  0x1a   :  { %372 = vmatpush3.bf16.msra.mxu1 %v371_v42 }
  0x1b   :  { %373 = vmatprep.subr.bf16.mxu1 %v407_v3 }
  0x1c   :  { %351 = vmatpush3.bf16.msra.mxu0 %v350_v39 }
  0x1d   :  { %352 = vmatprep.subr.bf16.mxu0 %v407_v3 }
  0x1e   :  { %375 = vmatpush3.bf16.msra.mxu1 %v374_v46 }
  0x1f   :  { %376 = vmatprep.subr.bf16.mxu1 %v407_v3 }
  0x20   :  { %354 = vmatpush3.bf16.msra.mxu0 %v353_v45 }
  0x22   :  { %378 = vmatpush3.bf16.msra.mxu1 %v377_v50 }
  0x23   :  { %294 = vmatmul.mubr.f32.vlgmr.msra.gmra.mrb[0].mxu0 %v21_v47 }
  0xf6   :  { %v111_v52 = vpop.f32.mrb[0].mxu0 }
  0xf7   :  { %v112_v53 = vadd.f32 %v225_v51, %v111_v52  ;;  %v295_v54 = vpop.f32.mrb[1].mxu0 }
  0xf9   :  { %v115_v55 = vmax.f32 %v112_v53, 0.0 }
  0xfb   :  { %329 = vmatmul.mubr.f32.vlgmr.msra.gmra.mrb[0].mxu1 %v115_v55 }
 0x1ce   :  { %v205_v57 = vpop.f32.mrb[0].mxu1 }
 0x1cf   :  { %v206_v58 = vadd.f32 %v226_v56, %v205_v57  ;;  %v330_v59 = vpop.f32.mrb[1].mxu1 }
 0x1d1   :  { %210 = vst.msk [vmem:[#allocation2] sm:$0xff] %vm209_vm1, %v206_v58 }
 0x1d2   :  { %394 = shalt.err (!%p391_p4)
}
 0x1d3   :  { %s395_s14 = scalar_lea.hbm %s579_s5, 128 }
 0x1d4   :  { %p396_p5 = scmp.ne.s32.totalorder %s579_s5, %s395_s14  ;;  %p399_p6 = scmp.lt.u32.totalorder %s395_s14, %s579_s5 }
 0x1d6   :  { %p401_p7 = pnand %p399_p6, %p396_p5 }
 0x1d8   :  { %404 = shalt.err (!%p401_p7)
}
 0x1d9   :  { %220 = dma.vmem_to_hbm [thread:$0]  %s218_s12, 128, %s579_s5, [#allocation3]  }
 0x1da   :  { %405 = dma.done.wait [#allocation3], 128  }
 0x1db   :  { %406 = vsyncadd [#allocation3], 4294967168 }
 0x1dc   :  { %224 = vsyncpa [#allocation3], 1 }

</bundles_post_ra>
